<compile_context>
chip_gen: v5e
topology: v5e:2x2
jax: 0.10.0
libtpu: 0.0.40
codegen_flags: <defaults>
</compile_context>

<pallas_src>
import jax
import jax.numpy as jnp
from jax.experimental import pallas as pl
from jax.experimental.pallas import tpu as pltpu

EMB_DIM = 300
HIDDEN_DIM = 100
NUM_CLASSES = 5


def _round_up(x, m):
    return (x + m - 1) // m * m


def _choose_batch_tile(B, cap=512):
    """Pick the batch tile.  Large tiles cut embedding-table re-streams; but
    keep >= 2 batch tiles when the batch can be split (>= 16 rows) so both
    v7x TensorCores are occupied on the 'parallel' grid axis."""
    TB = min(_round_up(B, 8), cap)
    BP = _round_up(B, TB)
    if BP // TB < 2 and TB >= 16:
        TB = _round_up((TB + 1) // 2, 8)
        BP = _round_up(B, TB)
    return TB, BP


def deep_cbow_kernel(tok_ref, emb_ref, w1_ref, b1_ref, w2_ref, b2_ref,
                     w3_ref, b3_ref, out_ref, bow_acc):
    """Grid = (batch_tiles [parallel], vocab_tiles [arbitrary/reduction]).

    tok_ref : (TB, T)  int32 token ids for this batch tile
    emb_ref : (TV, EP) bf16 embedding rows for this vocab tile
    w*/b*   : padded f32 MLP parameters, VMEM-resident (constant index maps)
    bow_acc : (TB, EP) f32 VMEM accumulator for the bag-of-words sum
    """
    k = pl.program_id(1)
    n_k = pl.num_programs(1)
    TB, T = tok_ref.shape
    TV = emb_ref.shape[0]

    @pl.when(k == 0)
    def _():
        bow_acc[...] = jnp.zeros_like(bow_acc)

    # counts[b, j] = #{t : ids[b, t] == k*TV + j}, accumulated in int32 and
    # converted to the matmul dtype exactly once after the loop.
    tok = tok_ref[...]                                             # (TB, T) int32
    lane_ids = jax.lax.broadcasted_iota(jnp.int32, (TB, TV), 1) + k * TV

    if T <= 16:
        counts_i32 = jnp.zeros((TB, TV), jnp.int32)
        for t in range(T):                                         # small & static
            counts_i32 = counts_i32 + (tok[:, t:t + 1] == lane_ids).astype(jnp.int32)
    else:
        def body(t, c):
            tok_t = jax.lax.dynamic_slice(tok, (0, t), (TB, 1))
            return c + (tok_t == lane_ids).astype(jnp.int32)
        counts_i32 = jax.lax.fori_loop(0, T, body,
                                       jnp.zeros((TB, TV), jnp.int32), unroll=4)

    counts = counts_i32.astype(jnp.bfloat16)   # exact: counts <= T << 256

    # bow += counts @ emb_tile   (bf16 x bf16 -> f32 accumulate on the MXU)
    bow_acc[...] += jnp.dot(counts, emb_ref[...],
                            preferred_element_type=jnp.float32)

    # Finalize: run the 3-layer MLP on the accumulated bag-of-words vector.
    @pl.when(k == n_k - 1)
    def _():
        bow = bow_acc[...]                                         # (TB, EP) f32
        h1 = jnp.tanh(
            jnp.dot(bow, w1_ref[...], preferred_element_type=jnp.float32)
            + b1_ref[...])                                         # (TB, HP)
        h2 = jnp.tanh(
            jnp.dot(h1, w2_ref[...], preferred_element_type=jnp.float32)
            + b2_ref[...])                                         # (TB, HP)
        logits = (
            jnp.dot(h2, w3_ref[...], preferred_element_type=jnp.float32)
            + b3_ref[...])                                         # (TB, CP)
        out_ref[...] = logits.astype(out_ref.dtype)


def deep_cbow_forward(token_ids, emb_table, w1, b1, w2, b2, w3, b3):
    """token_ids: (B, T) int32.  Weights stored as (in, out): y = x @ W + b
    (equivalent to PyTorch's x @ W_pt.T + b)."""
    B, T = token_ids.shape
    V, E = emb_table.shape
    H = w1.shape[1]
    C = w3.shape[1]

    # ---- lane/sublane-friendly padded sizes (zero padding is exact) ----
    EP = _round_up(E, 128)                      # 300 -> 384
    HP = _round_up(H, 128)                      # 100 -> 128
    CP = _round_up(C, 128)                      # 5   -> 128 (lane-dense store)
    TV = min(_round_up(V, 128), 2048)           # big vocab tile: fewer steps,
    VP = _round_up(V, TV)                       #   bigger DMAs (~85%+ roofline)
    TB, BP = _choose_batch_tile(B, cap=512)     # big batch tile: fewer emb
                                                #   re-streams, full MXU rows

    tok_p = jnp.pad(token_ids.astype(jnp.int32), ((0, BP - B), (0, 0)))
    # Embedding table streamed as bf16 (halves the dominant HBM stream; MXU is
    # bf16-native on v5e/v6e/v7x).  MLP params stay f32.
    emb_p = jnp.pad(emb_table.astype(jnp.float32),
                    ((0, VP - V), (0, EP - E))).astype(jnp.bfloat16)
    w1_p = jnp.pad(w1.astype(jnp.float32), ((0, EP - E), (0, HP - H)))
    w2_p = jnp.pad(w2.astype(jnp.float32), ((0, HP - H), (0, HP - H)))
    w3_p = jnp.pad(w3.astype(jnp.float32), ((0, HP - H), (0, CP - C)))
    b1_p = jnp.pad(b1.astype(jnp.float32).reshape(1, H), ((0, 0), (0, HP - H)))
    b2_p = jnp.pad(b2.astype(jnp.float32).reshape(1, H), ((0, 0), (0, HP - H)))
    b3_p = jnp.pad(b3.astype(jnp.float32).reshape(1, C), ((0, 0), (0, CP - C)))

    n_batch_tiles = BP // TB
    n_vocab_tiles = VP // TV
    grid = (n_batch_tiles, n_vocab_tiles)

    # Deepen prefetch on the embedding stream only when the vocab sweep is long
    # enough for a third buffer to help hide residual DMA latency.
    emb_spec_kwargs = {}
    if n_vocab_tiles >= 3:
        emb_spec_kwargs["pipeline_mode"] = pl.Buffered(3)
    emb_spec = pl.BlockSpec((TV, EP), lambda i, k: (k, 0), **emb_spec_kwargs)

    flops = (2 * BP * VP * EP                      # counts @ emb_table
             + 2 * BP * (EP * HP + HP * HP + HP * CP)
             + BP * T * VP)                        # one-hot compares/adds
    transcendentals = 2 * BP * HP                  # two tanh layers
    # Embedding table is re-read once per batch tile -> count it that many times.
    bytes_accessed = (tok_p.size * 4
                      + emb_p.size * emb_p.dtype.itemsize * n_batch_tiles
                      + 4 * (w1_p.size + w2_p.size + w3_p.size
                             + b1_p.size + b2_p.size + b3_p.size)
                      + 4 * BP * CP)

    logits_p = pl.pallas_call(
        deep_cbow_kernel,
        out_shape=jax.ShapeDtypeStruct((BP, CP), jnp.float32),
        grid_spec=pltpu.PrefetchScalarGridSpec(
            num_scalar_prefetch=0,
            grid=grid,
            in_specs=[
                pl.BlockSpec((TB, T), lambda i, k: (i, 0)),     # token ids
                emb_spec,                                       # emb tile (bf16)
                pl.BlockSpec((EP, HP), lambda i, k: (0, 0)),    # w1 (resident)
                pl.BlockSpec((1, HP), lambda i, k: (0, 0)),     # b1
                pl.BlockSpec((HP, HP), lambda i, k: (0, 0)),    # w2
                pl.BlockSpec((1, HP), lambda i, k: (0, 0)),     # b2
                pl.BlockSpec((HP, CP), lambda i, k: (0, 0)),    # w3
                pl.BlockSpec((1, CP), lambda i, k: (0, 0)),     # b3
            ],
            out_specs=pl.BlockSpec((TB, CP), lambda i, k: (i, 0)),
            scratch_shapes=[pltpu.VMEM((TB, EP), jnp.float32)],
        ),
        compiler_params=pltpu.CompilerParams(
            dimension_semantics=("parallel", "arbitrary"),
            vmem_limit_bytes=32 * 1024 * 1024),   # covers buffered emb tiles,
                                                  # safely under v7x 64 MiB
        cost_estimate=pl.CostEstimate(
            flops=flops,
            transcendentals=transcendentals,
            bytes_accessed=bytes_accessed),
    )(tok_p, emb_p, w1_p, b1_p, w2_p, b2_p, w3_p, b3_p)

    return logits_p[:B, :C]


def reference_forward(token_ids, emb_table, w1, b1, w2, b2, w3, b3):
    embeds = jnp.take(emb_table, token_ids, axis=0).astype(jnp.float32)
    bow = embeds.sum(axis=1)
    h1 = jnp.tanh(bow @ w1 + b1)
    h2 = jnp.tanh(h1 @ w2 + b2)
    return h2 @ w3 + b3


if __name__ == "__main__":
    B, T = 2, 8
    VOCAB_SIZE = 64

    key = jax.random.PRNGKey(0)
    k_emb, k_w1, k_b1, k_w2, k_b2, k_w3, k_b3, k_tok = jax.random.split(key, 8)

    emb_table = jax.random.normal(k_emb, (VOCAB_SIZE, EMB_DIM), jnp.float32) * 0.1
    w1 = jax.random.normal(k_w1, (EMB_DIM, HIDDEN_DIM), jnp.float32) * 0.05
    b1 = jax.random.normal(k_b1, (HIDDEN_DIM,), jnp.float32) * 0.05
    w2 = jax.random.normal(k_w2, (HIDDEN_DIM, HIDDEN_DIM), jnp.float32) * 0.05
    b2 = jax.random.normal(k_b2, (HIDDEN_DIM,), jnp.float32) * 0.05
    w3 = jax.random.normal(k_w3, (HIDDEN_DIM, NUM_CLASSES), jnp.float32) * 0.05
    b3 = jax.random.normal(k_b3, (NUM_CLASSES,), jnp.float32) * 0.05

    token_ids = jax.random.randint(k_tok, (B, T), 0, VOCAB_SIZE, jnp.int32)

    logits = deep_cbow_forward(token_ids, emb_table, w1, b1, w2, b2, w3, b3)
    logits = jax.block_until_ready(logits)

    ref = reference_forward(token_ids, emb_table, w1, b1, w2, b2, w3, b3)
    assert logits.shape == (B, NUM_CLASSES)
    # bf16 embedding feed (and default-precision MXU for the f32 MLP dots)
    # introduce ~1e-3 level deviation from the pure-f32 reference.
    assert jnp.allclose(logits, ref, atol=1e-2, rtol=1e-2), (
        f"max abs err = {jnp.max(jnp.abs(logits - ref))}")

    print("KERNEL_OK")
</pallas_src>

<mosaic_0001>
module attributes {stable_mosaic.version = 11 : i64} {
  func.func @deep_cbow_kernel(%arg0: i32, %arg1: i32, %arg2: memref<8x8xi32, #tpu.memory_space<vmem>>, %arg3: memref<128x384xbf16, #tpu.memory_space<vmem>>, %arg4: memref<384x128xf32, #tpu.memory_space<vmem>>, %arg5: memref<1x128xf32, #tpu.memory_space<vmem>>, %arg6: memref<128x128xf32, #tpu.memory_space<vmem>>, %arg7: memref<1x128xf32, #tpu.memory_space<vmem>>, %arg8: memref<128x128xf32, #tpu.memory_space<vmem>>, %arg9: memref<1x128xf32, #tpu.memory_space<vmem>>, %arg10: memref<8x128xf32, #tpu.memory_space<vmem>>, %arg11: memref<8x384xf32, #tpu.memory_space<vmem>>) attributes {dimension_semantics = [#tpu.dimension_semantics<parallel>, #tpu.dimension_semantics<arbitrary>], iteration_bounds = array<i64: 1, 1>, scalar_prefetch = 0 : i64, scratch_operands = 1 : i64, tpu.core_type = #tpu.core_type<tc>, window_params = [{transform_indices = @transform_0, window_bounds = array<i64: 8, 8>}, {transform_indices = @transform_1, window_bounds = array<i64: 128, 384>}, {pipeline_mode = #tpu.pipeline_mode<synchronous>, transform_indices = @transform_2, window_bounds = array<i64: 384, 128>}, {pipeline_mode = #tpu.pipeline_mode<synchronous>, transform_indices = @transform_3, window_bounds = array<i64: 1, 128>}, {pipeline_mode = #tpu.pipeline_mode<synchronous>, transform_indices = @transform_4, window_bounds = array<i64: 128, 128>}, {pipeline_mode = #tpu.pipeline_mode<synchronous>, transform_indices = @transform_5, window_bounds = array<i64: 1, 128>}, {pipeline_mode = #tpu.pipeline_mode<synchronous>, transform_indices = @transform_6, window_bounds = array<i64: 128, 128>}, {pipeline_mode = #tpu.pipeline_mode<synchronous>, transform_indices = @transform_7, window_bounds = array<i64: 1, 128>}, {transform_indices = @transform_8, window_bounds = array<i64: 8, 128>}]} {
    %c0_i32 = arith.constant 0 : i32
    %0 = arith.cmpi eq, %arg1, %c0_i32 : i32
    %1 = arith.extui %0 : i1 to i32
    %c0_i32_0 = arith.constant 0 : i32
    %2 = arith.cmpi ne, %1, %c0_i32_0 : i32
    scf.if %2 {
      %cst_11 = arith.constant 0.000000e+00 : f32
      %58 = vector.broadcast %cst_11 : f32 to vector<8x384xf32>
      %c0_12 = arith.constant 0 : index
      %c0_13 = arith.constant 0 : index
      %59 = vector.load %arg11[%c0_12, %c0_13] : memref<8x384xf32, #tpu.memory_space<vmem>>, vector<8x384xf32>
      tpu.vector_store %arg11[%c0_12, %c0_13], %58 {strides = array<i32>} : memref<8x384xf32, #tpu.memory_space<vmem>>, vector<8x384xf32>,
    } else {
    }
    %c0 = arith.constant 0 : index
    %c0_1 = arith.constant 0 : index
    %3 = vector.load %arg2[%c0, %c0_1] : memref<8x8xi32, #tpu.memory_space<vmem>>, vector<8x8xi32>
    %4 = tpu.iota {dimensions = array<i32: 1>} : vector<8x128xi32>
    %c128_i32 = arith.constant 128 : i32
    %5 = arith.muli %arg1, %c128_i32 : i32
    %6 = vector.broadcast %5 : i32 to vector<8x128xi32>
    %7 = arith.addi %4, %6 : vector<8x128xi32>
    %c0_i32_2 = arith.constant 0 : i32
    %8 = vector.broadcast %c0_i32_2 : i32 to vector<8x128xi32>
    %9 = vector.extract_strided_slice %3 {offsets = [0, 0], sizes = [8, 1], strides = [1, 1]} : vector<8x8xi32> to vector<8x1xi32>
    %10 = vector.broadcast %9 : vector<8x1xi32> to vector<8x128xi32>
    %11 = arith.cmpi eq, %10, %7 : vector<8x128xi32>
    %12 = arith.extui %11 : vector<8x128xi1> to vector<8x128xi32>
    %13 = arith.addi %8, %12 : vector<8x128xi32>
    %14 = vector.extract_strided_slice %3 {offsets = [0, 1], sizes = [8, 1], strides = [1, 1]} : vector<8x8xi32> to vector<8x1xi32>
    %15 = vector.broadcast %14 : vector<8x1xi32> to vector<8x128xi32>
    %16 = arith.cmpi eq, %15, %7 : vector<8x128xi32>
    %17 = arith.extui %16 : vector<8x128xi1> to vector<8x128xi32>
    %18 = arith.addi %13, %17 : vector<8x128xi32>
    %19 = vector.extract_strided_slice %3 {offsets = [0, 2], sizes = [8, 1], strides = [1, 1]} : vector<8x8xi32> to vector<8x1xi32>
    %20 = vector.broadcast %19 : vector<8x1xi32> to vector<8x128xi32>
    %21 = arith.cmpi eq, %20, %7 : vector<8x128xi32>
    %22 = arith.extui %21 : vector<8x128xi1> to vector<8x128xi32>
    %23 = arith.addi %18, %22 : vector<8x128xi32>
    %24 = vector.extract_strided_slice %3 {offsets = [0, 3], sizes = [8, 1], strides = [1, 1]} : vector<8x8xi32> to vector<8x1xi32>
    %25 = vector.broadcast %24 : vector<8x1xi32> to vector<8x128xi32>
    %26 = arith.cmpi eq, %25, %7 : vector<8x128xi32>
    %27 = arith.extui %26 : vector<8x128xi1> to vector<8x128xi32>
    %28 = arith.addi %23, %27 : vector<8x128xi32>
    %29 = vector.extract_strided_slice %3 {offsets = [0, 4], sizes = [8, 1], strides = [1, 1]} : vector<8x8xi32> to vector<8x1xi32>
    %30 = vector.broadcast %29 : vector<8x1xi32> to vector<8x128xi32>
    %31 = arith.cmpi eq, %30, %7 : vector<8x128xi32>
    %32 = arith.extui %31 : vector<8x128xi1> to vector<8x128xi32>
    %33 = arith.addi %28, %32 : vector<8x128xi32>
    %34 = vector.extract_strided_slice %3 {offsets = [0, 5], sizes = [8, 1], strides = [1, 1]} : vector<8x8xi32> to vector<8x1xi32>
    %35 = vector.broadcast %34 : vector<8x1xi32> to vector<8x128xi32>
    %36 = arith.cmpi eq, %35, %7 : vector<8x128xi32>
    %37 = arith.extui %36 : vector<8x128xi1> to vector<8x128xi32>
    %38 = arith.addi %33, %37 : vector<8x128xi32>
    %39 = vector.extract_strided_slice %3 {offsets = [0, 6], sizes = [8, 1], strides = [1, 1]} : vector<8x8xi32> to vector<8x1xi32>
    %40 = vector.broadcast %39 : vector<8x1xi32> to vector<8x128xi32>
    %41 = arith.cmpi eq, %40, %7 : vector<8x128xi32>
    %42 = arith.extui %41 : vector<8x128xi1> to vector<8x128xi32>
    %43 = arith.addi %38, %42 : vector<8x128xi32>
    %44 = vector.extract_strided_slice %3 {offsets = [0, 7], sizes = [8, 1], strides = [1, 1]} : vector<8x8xi32> to vector<8x1xi32>
    %45 = vector.broadcast %44 : vector<8x1xi32> to vector<8x128xi32>
    %46 = arith.cmpi eq, %45, %7 : vector<8x128xi32>
    %47 = arith.extui %46 : vector<8x128xi1> to vector<8x128xi32>
    %48 = arith.addi %43, %47 : vector<8x128xi32>
    %49 = arith.sitofp %48 : vector<8x128xi32> to vector<8x128xbf16>
    %c0_3 = arith.constant 0 : index
    %c0_4 = arith.constant 0 : index
    %50 = vector.load %arg11[%c0_3, %c0_4] : memref<8x384xf32, #tpu.memory_space<vmem>>, vector<8x384xf32>
    %c0_5 = arith.constant 0 : index
    %c0_6 = arith.constant 0 : index
    %51 = vector.load %arg3[%c0_5, %c0_6] : memref<128x384xbf16, #tpu.memory_space<vmem>>, vector<128x384xbf16>
    %cst = arith.constant dense<0.000000e+00> : vector<8x384xf32>
    %52 = tpu.matmul %49, %51, %cst {dimension_numbers = #tpu.dot_dimension_numbers<[1], [0], [0], [1], [0, 0, 1, 1], [], []>} : vector<8x128xbf16>, vector<128x384xbf16>, vector<8x384xf32> -> vector<8x384xf32>
    %53 = arith.addf %50, %52 : vector<8x384xf32>
    %c0_7 = arith.constant 0 : index
    %c0_8 = arith.constant 0 : index
    %54 = vector.load %arg11[%c0_7, %c0_8] : memref<8x384xf32, #tpu.memory_space<vmem>>, vector<8x384xf32>
    tpu.vector_store %arg11[%c0_7, %c0_8], %53 {strides = array<i32>} : memref<8x384xf32, #tpu.memory_space<vmem>>, vector<8x384xf32>,
    %c0_i32_9 = arith.constant 0 : i32
    %55 = arith.cmpi eq, %arg1, %c0_i32_9 : i32
    %56 = arith.extui %55 : i1 to i32
    %c0_i32_10 = arith.constant 0 : i32
    %57 = arith.cmpi ne, %56, %c0_i32_10 : i32
    scf.if %57 {
      %c0_11 = arith.constant 0 : index
      %c0_12 = arith.constant 0 : index
      %58 = vector.load %arg11[%c0_11, %c0_12] : memref<8x384xf32, #tpu.memory_space<vmem>>, vector<8x384xf32>
      %c0_13 = arith.constant 0 : index
      %c0_14 = arith.constant 0 : index
      %59 = vector.load %arg4[%c0_13, %c0_14] : memref<384x128xf32, #tpu.memory_space<vmem>>, vector<384x128xf32>
      %cst_15 = arith.constant dense<0.000000e+00> : vector<8x128xf32>
      %60 = tpu.matmul %58, %59, %cst_15 {dimension_numbers = #tpu.dot_dimension_numbers<[1], [0], [0], [1], [0, 0, 1, 1], [], []>} : vector<8x384xf32>, vector<384x128xf32>, vector<8x128xf32> -> vector<8x128xf32>
      %c0_16 = arith.constant 0 : index
      %c0_17 = arith.constant 0 : index
      %61 = vector.load %arg5[%c0_16, %c0_17] : memref<1x128xf32, #tpu.memory_space<vmem>>, vector<1x128xf32>
      %62 = vector.broadcast %61 : vector<1x128xf32> to vector<8x128xf32>
      %63 = arith.addf %60, %62 : vector<8x128xf32>
      %64 = math.tanh %63 : vector<8x128xf32>
      %c0_18 = arith.constant 0 : index
      %c0_19 = arith.constant 0 : index
      %65 = vector.load %arg6[%c0_18, %c0_19] : memref<128x128xf32, #tpu.memory_space<vmem>>, vector<128x128xf32>
      %cst_20 = arith.constant dense<0.000000e+00> : vector<8x128xf32>
      %66 = tpu.matmul %64, %65, %cst_20 {dimension_numbers = #tpu.dot_dimension_numbers<[1], [0], [0], [1], [0, 0, 1, 1], [], []>} : vector<8x128xf32>, vector<128x128xf32>, vector<8x128xf32> -> vector<8x128xf32>
      %c0_21 = arith.constant 0 : index
      %c0_22 = arith.constant 0 : index
      %67 = vector.load %arg7[%c0_21, %c0_22] : memref<1x128xf32, #tpu.memory_space<vmem>>, vector<1x128xf32>
      %68 = vector.broadcast %67 : vector<1x128xf32> to vector<8x128xf32>
      %69 = arith.addf %66, %68 : vector<8x128xf32>
      %70 = math.tanh %69 : vector<8x128xf32>
      %c0_23 = arith.constant 0 : index
      %c0_24 = arith.constant 0 : index
      %71 = vector.load %arg8[%c0_23, %c0_24] : memref<128x128xf32, #tpu.memory_space<vmem>>, vector<128x128xf32>
      %cst_25 = arith.constant dense<0.000000e+00> : vector<8x128xf32>
      %72 = tpu.matmul %70, %71, %cst_25 {dimension_numbers = #tpu.dot_dimension_numbers<[1], [0], [0], [1], [0, 0, 1, 1], [], []>} : vector<8x128xf32>, vector<128x128xf32>, vector<8x128xf32> -> vector<8x128xf32>
      %c0_26 = arith.constant 0 : index
      %c0_27 = arith.constant 0 : index
      %73 = vector.load %arg9[%c0_26, %c0_27] : memref<1x128xf32, #tpu.memory_space<vmem>>, vector<1x128xf32>
      %74 = vector.broadcast %73 : vector<1x128xf32> to vector<8x128xf32>
      %75 = arith.addf %72, %74 : vector<8x128xf32>
      %c0_28 = arith.constant 0 : index
      %c0_29 = arith.constant 0 : index
      %76 = vector.load %arg10[%c0_28, %c0_29] : memref<8x128xf32, #tpu.memory_space<vmem>>, vector<8x128xf32>
      tpu.vector_store %arg10[%c0_28, %c0_29], %75 {strides = array<i32>} : memref<8x128xf32, #tpu.memory_space<vmem>>, vector<8x128xf32>,
    } else {
    }
    return
  }
  func.func @transform_0(%arg0: i32, %arg1: i32) -> (i32, i32) {
    %c0_i32 = arith.constant 0 : i32
    %c0_i32_0 = arith.constant 0 : i32
    return %arg0, %c0_i32 : i32, i32
  }
  func.func @transform_1(%arg0: i32, %arg1: i32) -> (i32, i32) {
    %c0_i32 = arith.constant 0 : i32
    %c0_i32_0 = arith.constant 0 : i32
    return %arg1, %c0_i32 : i32, i32
  }
  func.func @transform_2(%arg0: i32, %arg1: i32) -> (i32, i32) {
    %c0_i32 = arith.constant 0 : i32
    %c0_i32_0 = arith.constant 0 : i32
    %c0_i32_1 = arith.constant 0 : i32
    return %c0_i32, %c0_i32_0 : i32, i32
  }
  func.func @transform_3(%arg0: i32, %arg1: i32) -> (i32, i32) {
    %c0_i32 = arith.constant 0 : i32
    %c0_i32_0 = arith.constant 0 : i32
    %c0_i32_1 = arith.constant 0 : i32
    return %c0_i32, %c0_i32_0 : i32, i32
  }
  func.func @transform_4(%arg0: i32, %arg1: i32) -> (i32, i32) {
    %c0_i32 = arith.constant 0 : i32
    %c0_i32_0 = arith.constant 0 : i32
    %c0_i32_1 = arith.constant 0 : i32
    return %c0_i32, %c0_i32_0 : i32, i32
  }
  func.func @transform_5(%arg0: i32, %arg1: i32) -> (i32, i32) {
    %c0_i32 = arith.constant 0 : i32
    %c0_i32_0 = arith.constant 0 : i32
    %c0_i32_1 = arith.constant 0 : i32
    return %c0_i32, %c0_i32_0 : i32, i32
  }
  func.func @transform_6(%arg0: i32, %arg1: i32) -> (i32, i32) {
    %c0_i32 = arith.constant 0 : i32
    %c0_i32_0 = arith.constant 0 : i32
    %c0_i32_1 = arith.constant 0 : i32
    return %c0_i32, %c0_i32_0 : i32, i32
  }
  func.func @transform_7(%arg0: i32, %arg1: i32) -> (i32, i32) {
    %c0_i32 = arith.constant 0 : i32
    %c0_i32_0 = arith.constant 0 : i32
    %c0_i32_1 = arith.constant 0 : i32
    return %c0_i32, %c0_i32_0 : i32, i32
  }
  func.func @transform_8(%arg0: i32, %arg1: i32) -> (i32, i32) {
    %c0_i32 = arith.constant 0 : i32
    %c0_i32_0 = arith.constant 0 : i32
    return %arg0, %c0_i32 : i32, i32
  }
}

</mosaic_0001>

<bundles_post_ra>
// kernel: tpu_custom_call.1
= control target key start
LH: loop header
LB: loop body
LE: loop exit
PB: predicated region body
PF: predicated region fallthrough
CT: control target
= control target key end

     0   :  { %13 = vsyncpa [#allocation4], 0  ;;  %s1017_s0 = inlined_call_operand.hbm [shape: s32[8,8], index: 0, kind: input, shape index: {}]   ;;  %s1018_s1 = inlined_call_operand.hbm [shape: bf16[128,384], index: 1, kind: input, shape index: {}]   ;;  %s1019_s2 = inlined_call_operand.hbm [shape: f32[384,128], index: 2, kind: input, shape index: {}]   ;;  %s1020_s3 = inlined_call_operand.vmem [shape: f32[1,128], index: 3, kind: input, shape index: {}]   ;;  %s1021_s4 = inlined_call_operand.hbm [shape: f32[128,128], index: 4, kind: input, shape index: {}]   ;;  %s1022_s5 = inlined_call_operand.vmem [shape: f32[1,128], index: 5, kind: input, shape index: {}]   ;;  %s1023_s6 = inlined_call_operand.hbm [shape: f32[128,128], index: 6, kind: input, shape index: {}]   ;;  %s1024_s7 = inlined_call_operand.vmem [shape: f32[1,128], index: 7, kind: input, shape index: {}]   ;;  %s1025_s8 = inlined_call_operand.hbm [shape: f32[8,128], index: 8, kind: output, shape index: {}]  }
   0x1   :  { %14 = vsyncpa [#allocation7], 0 }
   0x2   :  { %15 = vsyncpa [#allocation10], 0  ;;  %s32_s29 = sshll.u32 %s1018_s1, 4  ;;  %s33_s29 = int_to_ptr.hbm [resolvable:$true] %s32_s29 }
   0x3   :  { %16 = vsyncpa [#allocation5], 0  ;;  %s902_s30 = smov [#allocation6]   ;;  %s903_s10 = smov 192  }
   0x4   :  { %s34_s9 = sshll.u32 %s902_s30, 4  ;;  %s904_s11 = smov 12   ;;  %s35_s9 = int_to_ptr.vmem [resolvable:$true] %s34_s9 }
   0x5   :  { %40 = dma.hbm_to_vmem [thread:$0]  %s33_s29, 3072, %s35_s9, [#allocation7], %s903_s10, %s903_s10, %s904_s11  }
   0x6   :  { %s60_s14 = sshll.u32 %s1021_s4, 4  ;;  %s905_s15 = smov [#allocation9]   ;;  %s61_s14 = int_to_ptr.hbm [resolvable:$true] %s60_s14 }
   0x7   :  { %s62_s16 = sshll.u32 %s905_s15, 4  ;;  %s22_s19 = sshll.u32 %s1017_s0, 4  ;;  %s63_s16 = int_to_ptr.vmem [resolvable:$true] %s62_s16  ;;  %s23_s19 = int_to_ptr.hbm [resolvable:$true] %s22_s19 }
   0x8   :  { %s906_s1 = smov 128   ;;  %s907_s20 = smov 8  }
   0x9   :  { %68 = dma.hbm_to_vmem [thread:$0]  %s61_s14, 2048, %s63_s16, [#allocation10], %s906_s1, %s906_s1, %s907_s20  }
   0xa   :  { %s45_s23 = sshll.u32 %s1019_s2, 4  ;;  %s908_s24 = smov [#allocation3]   ;;  %s46_s23 = int_to_ptr.hbm [resolvable:$true] %s45_s23 }
   0xb   :  { %s24_s25 = sshll.u32 %s908_s24, 4  ;;  %s909_s4 = smov [#allocation8]   ;;  %s25_s25 = int_to_ptr.vmem [resolvable:$true] %s24_s25 }
   0xc   :  { %27 = dma.hbm_to_vmem [thread:$0]  %s23_s19, 128, %s25_s25, [#allocation4]  }
   0xd   :  { %s47_s26 = sshll.u32 %s909_s4, 4  ;;  %s75_s0 = sshll.u32 %s1023_s6, 4  ;;  %s48_s26 = int_to_ptr.vmem [resolvable:$true] %s47_s26  ;;  %s76_s0 = int_to_ptr.hbm [resolvable:$true] %s75_s0 }
   0xe   :  { %53 = dma.hbm_to_vmem [thread:$0]  %s46_s23, 6144, %s48_s26, [#allocation7], %s906_s1, %s906_s1, %s907_s20  }
   0xf   :  { %s910_s29 = smov [#allocation11]  }
  0x10   :  { %s77_s30 = sshll.u32 %s910_s29, 4  ;;  %s78_s30 = int_to_ptr.vmem [resolvable:$true] %s77_s30 }
  0x11   :  { %83 = dma.hbm_to_vmem [thread:$0]  %s76_s0, 2048, %s78_s30, [#allocation10], %s906_s1, %s906_s1, %s907_s20  }
  0x12   :  { %894 = dma.done.wait [#allocation4], 128  }
  0x13   :  { %895 = vsyncadd [#allocation4], 4294967168 }
  0x14   :  { %896 = dma.done.wait [#allocation7], 9216  }
  0x15   :  { %897 = vsyncadd [#allocation7], 4294958080 }
  0x16   :  { %898 = dma.done.wait [#allocation10], 4096  }
  0x17   :  { %899 = vsyncadd [#allocation10], 4294963200  ;;  %v911_v0 = vmov 0   ;;  %v912_v1 = vmov 2   ;;  %v913_v2 = vmov 4   ;;  %v113_v3 = vld [vmem:[#allocation3] sm:$0xff] }
  0x18   :  { %734 = vset.pattern.permute.xlu0 %v911_v0  ;;  %736 = vset.pattern.permute.xlu1 %v912_v1  ;;  %v682_v4 = vld [vmem:[#allocation6 + $0xa8] sm:$0xf]  ;;  %v714_v5 = vld [vmem:[#allocation6 + $0xb0] sm:$0xf0]  ;;  %v713_v7 = vld [vmem:[#allocation6 + $0xac] sm:$0xf] }
  0x19   :  { %738 = vset.pattern.permute.xlu2 %v913_v2  ;;  %120 = vperm.xlu0 %734, %v113_v3   ;;  %v683_v6 = vor.u32 %v714_v5, %v682_v4  ;;  %v684_v8 = vld [vmem:[#allocation6 + $0xb4] sm:$0xf0]  ;;  %v690_v9 = vld [vmem:[#allocation6 + $0xb0] sm:$0xf]  ;;  %v715_v11 = vld [vmem:[#allocation6 + $0xb8] sm:$0xf0] }
  0x1a   :  { %131 = vperm.xlu1 %736, %v113_v3   ;;  %143 = vperm.xlu2 %738, %v113_v3   ;;  %v687_v10 = vor.u32 %v713_v7, %v684_v8  ;;  %v691_v12 = vor.u32 %v715_v11, %v690_v9  ;;  %v914_v13 = vmov 1   ;;  %v915_v14 = vmov 3   ;;  %v670_v18 = vld [vmem:[#allocation6 + $0x90] sm:$0xf]  ;;  %v711_v19 = vld [vmem:[#allocation6 + $0x98] sm:$0xf0] }
  0x1b   :  { %331 = vmatpush.bf16.msra.mxu0 %v683_v6  ;;  %v916_v15 = vmov 5   ;;  %v917_v16 = vmov 6   ;;  %v918_v17 = vmov 7   ;;  %v710_v20 = vld [vmem:[#allocation6 + $0x94] sm:$0xf]  ;;  %v671_v21 = vor.u32 %v711_v19, %v670_v18  ;;  %v397_v19 = vld [vmem:[#allocation8 + $0x78] sm:$0xff] }
  0x1c   :  { %344 = vmatpush.bf16.msra.mxu1 %v687_v10  ;;  %357 = vmatpush.bf16.msra.mxu2 %v691_v12  ;;  %v672_v22 = vld [vmem:[#allocation6 + $0x9c] sm:$0xf0]  ;;  %v678_v23 = vld [vmem:[#allocation6 + $0x98] sm:$0xf]  ;;  %v712_v24 = vld [vmem:[#allocation6 + $0xa0] sm:$0xf0] }
  0x1d   :  { %v675_v25 = vor.u32 %v710_v20, %v672_v22  ;;  %v679_v26 = vor.u32 %v712_v24, %v678_v23  ;;  %v658_v27 = vld [vmem:[#allocation6 + $0x78] sm:$0xf]  ;;  %v708_v28 = vld [vmem:[#allocation6 + $0x80] sm:$0xf0]  ;;  %v707_v29 = vld [vmem:[#allocation6 + $0x7c] sm:$0xf]  ;;  %v114_v22 = vlaneseq  ;;  %434 = vmatpush.msra.mxu3 %v397_v19 }
  0x1e   :  { %v659_v30 = vor.u32 %v708_v28, %v658_v27  ;;  %v660_v31 = vld [vmem:[#allocation6 + $0x84] sm:$0xf0]  ;;  %v666_v32 = vld [vmem:[#allocation6 + $0x80] sm:$0xf]  ;;  %v709_v33 = vld [vmem:[#allocation6 + $0x88] sm:$0xf0] }
  0x1f   :  { %332 = vmatpush.bf16.msra.mxu0 %v671_v21  ;;  %v663_v34 = vor.u32 %v707_v29, %v660_v31  ;;  %v667_v35 = vor.u32 %v709_v33, %v666_v32  ;;  %v646_v36 = vld [vmem:[#allocation6 + $0x60] sm:$0xf]  ;;  %v705_v37 = vld [vmem:[#allocation6 + $0x68] sm:$0xf0]  ;;  %v704_v38 = vld [vmem:[#allocation6 + $0x64] sm:$0xf] }
  0x20   :  { %345 = vmatpush.bf16.msra.mxu1 %v675_v25  ;;  %358 = vmatpush.bf16.msra.mxu2 %v679_v26  ;;  %v647_v39 = vor.u32 %v705_v37, %v646_v36  ;;  %v648_v40 = vld [vmem:[#allocation6 + $0x6c] sm:$0xf0]  ;;  %v654_v41 = vld [vmem:[#allocation6 + $0x68] sm:$0xf]  ;;  %v706_v42 = vld [vmem:[#allocation6 + $0x70] sm:$0xf0] }
  0x21   :  { %735 = vset.pattern.permute.xlu0 %v914_v13  ;;  %v651_v43 = vor.u32 %v704_v38, %v648_v40  ;;  %v655_v44 = vor.u32 %v706_v42, %v654_v41  ;;  %v634_v45 = vld [vmem:[#allocation6 + $0x48] sm:$0xf]  ;;  %v702_v46 = vld [vmem:[#allocation6 + $0x50] sm:$0xf0]  ;;  %v701_v47 = vld [vmem:[#allocation6 + $0x4c] sm:$0xf] }
  0x22   :  { %737 = vset.pattern.permute.xlu1 %v915_v14  ;;  %125 = vperm.xlu0 %735, %v113_v3   ;;  %v635_v48 = vor.u32 %v702_v46, %v634_v45  ;;  %v636_v49 = vld [vmem:[#allocation6 + $0x54] sm:$0xf0]  ;;  %v642_v50 = vld [vmem:[#allocation6 + $0x50] sm:$0xf]  ;;  %v703_v51 = vld [vmem:[#allocation6 + $0x58] sm:$0xf0] }
  0x23   :  { %137 = vperm.xlu1 %737, %v113_v3   ;;  %739 = vset.pattern.permute.xlu2 %v916_v15  ;;  %v639_v52 = vor.u32 %v701_v47, %v636_v49  ;;  %v643_v53 = vor.u32 %v703_v51, %v642_v50  ;;  %v622_v54 = vld [vmem:[#allocation6 + $0x30] sm:$0xf]  ;;  %v699_v55 = vld [vmem:[#allocation6 + $0x38] sm:$0xf0]  ;;  %v698_v56 = vld [vmem:[#allocation6 + $0x34] sm:$0xf] }
  0x24   :  { %149 = vperm.xlu2 %739, %v113_v3   ;;  %333 = vmatpush.bf16.msra.mxu0 %v659_v30  ;;  %v623_v57 = vor.u32 %v699_v55, %v622_v54  ;;  %v624_v58 = vld [vmem:[#allocation6 + $0x3c] sm:$0xf0]  ;;  %v630_v59 = vld [vmem:[#allocation6 + $0x38] sm:$0xf]  ;;  %v700_v60 = vld [vmem:[#allocation6 + $0x40] sm:$0xf0] }
  0x25   :  { %346 = vmatpush.bf16.msra.mxu1 %v663_v34  ;;  %359 = vmatpush.bf16.msra.mxu2 %v667_v35  ;;  %v627_v61 = vor.u32 %v698_v56, %v624_v58  ;;  %v631_v62 = vor.u32 %v700_v60, %v630_v59  ;;  %v610_v63 = vld [vmem:[#allocation6 + $0x18] sm:$0xf]  ;;  %v696_v1 = vld [vmem:[#allocation6 + $0x20] sm:$0xf0]  ;;  %v695_v2 = vld [vmem:[#allocation6 + $0x1c] sm:$0xf] }
  0x26   :  { %v612_v4 = vld [vmem:[#allocation6 + $0x24] sm:$0xf0]  ;;  %v618_v5 = vld [vmem:[#allocation6 + $0x20] sm:$0xf]  ;;  %v697_v7 = vld [vmem:[#allocation6 + $0x28] sm:$0xf0] }
  0x27   :  { %v615_v6 = vor.u32 %v695_v2, %v612_v4  ;;  %v619_v8 = vor.u32 %v697_v7, %v618_v5  ;;  %v598_v9 = vld [vmem:[#allocation6] sm:$0xf]  ;;  %v693_v10 = vld [vmem:[#allocation6 + $0x8] sm:$0xf0]  ;;  %v692_v11 = vld [vmem:[#allocation6 + $0x4] sm:$0xf] }
  0x28   :  { %334 = vmatpush.bf16.msra.mxu0 %v647_v39  ;;  %v599_v12 = vor.u32 %v693_v10, %v598_v9  ;;  %v600_v13 = vld [vmem:[#allocation6 + $0xc] sm:$0xf0]  ;;  %v606_v14 = vld [vmem:[#allocation6 + $0x8] sm:$0xf]  ;;  %v694_v15 = vld [vmem:[#allocation6 + $0x10] sm:$0xf0] }
  0x29   :  { %347 = vmatpush.bf16.msra.mxu1 %v651_v43  ;;  %360 = vmatpush.bf16.msra.mxu2 %v655_v44  ;;  %v413_v20 = vld [vmem:[#allocation8 + $0xf8] sm:$0xff]  ;;  %v396_v21 = vld [vmem:[#allocation8 + $0x70] sm:$0xff]  ;;  %v395_v26 = vld [vmem:[#allocation8 + $0x68] sm:$0xff]  ;;  %v983_v32 = vand.u32 127, %v114_v22  ;;  %s919_s12 = smov [#allocation12]   ;;  %s584_s16 = sshll.u32 %s1025_s8, 4  ;;  %s585_s16 = int_to_ptr.hbm [resolvable:$true] %s584_s16 }
  0x2a   :  { %742 = vset.pattern.permute.xlu0 %v918_v17  ;;  %v412_v25 = vld [vmem:[#allocation8 + $0xf0] sm:$0xff]  ;;  %v411_v27 = vld [vmem:[#allocation8 + $0xe8] sm:$0xff]  ;;  %v429_v28 = vld [vmem:[#allocation8 + $0x178] sm:$0xff]  ;;  %435 = vmatpush.msra.mxu3 %v396_v21  ;;  %s582_s13 = sshll.u32 %s919_s12, 4  ;;  %s583_s13 = int_to_ptr.vmem [resolvable:$true] %s582_s13 }
  0x2b   :  { %740 = vset.pattern.permute.xlu1 %v917_v16  ;;  %v603_v16 = vor.u32 %v692_v11, %v600_v13  ;;  %v428_v29 = vld [vmem:[#allocation8 + $0x170] sm:$0xff]  ;;  %v394_v30 = vld [vmem:[#allocation8 + $0x60] sm:$0xff]  ;;  %v427_v33 = vld [vmem:[#allocation8 + $0x168] sm:$0xff] }
  0x2c   :  { %155 = vperm.xlu1 %740, %v113_v3   ;;  %741 = vset.pattern.permute.xlu2 %v918_v17  ;;  %v607_v17 = vor.u32 %v694_v15, %v606_v14  ;;  %v410_v31 = vld [vmem:[#allocation8 + $0xe0] sm:$0xff]  ;;  %v393_v35 = vld [vmem:[#allocation8 + $0x58] sm:$0xff]  ;;  %v392_v38 = vld [vmem:[#allocation8 + $0x50] sm:$0xff] }
  0x2d   :  { %161 = vperm.xlu2 %741, %v113_v3   ;;  %335 = vmatpush.bf16.msra.mxu0 %v635_v48  ;;  %v611_v3 = vor.u32 %v696_v1, %v610_v63  ;;  %v409_v36 = vld [vmem:[#allocation8 + $0xd8] sm:$0xff]  ;;  %v426_v37 = vld [vmem:[#allocation8 + $0x160] sm:$0xff]  ;;  %v408_v39 = vld [vmem:[#allocation8 + $0xd0] sm:$0xff] }
  0x2e   :  { %348 = vmatpush.bf16.msra.mxu1 %v639_v52  ;;  %361 = vmatpush.bf16.msra.mxu2 %v643_v53  ;;  %v425_v40 = vld [vmem:[#allocation8 + $0x158] sm:$0xff]  ;;  %v391_v43 = vld [vmem:[#allocation8 + $0x48] sm:$0xff]  ;;  %v424_v45 = vld [vmem:[#allocation8 + $0x150] sm:$0xff] }
  0x2f   :  { %436 = vmatpush.msra.mxu3 %v395_v26  ;;  %v407_v44 = vld [vmem:[#allocation8 + $0xc8] sm:$0xff]  ;;  %v390_v48 = vld [vmem:[#allocation8 + $0x40] sm:$0xff]  ;;  %v389_v53 = vld [vmem:[#allocation8 + $0x38] sm:$0xff] }
  0x30   :  { %v406_v49 = vld [vmem:[#allocation8 + $0xc0] sm:$0xff]  ;;  %v423_v51 = vld [vmem:[#allocation8 + $0x148] sm:$0xff]  ;;  %v405_v54 = vld [vmem:[#allocation8 + $0xb8] sm:$0xff] }
  0x31   :  { %336 = vmatpush.bf16.msra.mxu0 %v623_v57  ;;  %437 = vmatpush.msra.mxu3 %v394_v30  ;;  %v422_v56 = vld [vmem:[#allocation8 + $0x140] sm:$0xff]  ;;  %v388_v59 = vld [vmem:[#allocation8 + $0x30] sm:$0xff]  ;;  %v387_v1 = vld [vmem:[#allocation8 + $0x28] sm:$0xff] }
  0x32   :  { %349 = vmatpush.bf16.msra.mxu1 %v627_v61  ;;  %362 = vmatpush.bf16.msra.mxu2 %v631_v62  ;;  %v404_v60 = vld [vmem:[#allocation8 + $0xb0] sm:$0xff]  ;;  %v421_v62 = vld [vmem:[#allocation8 + $0x138] sm:$0xff]  ;;  %v403_v2 = vld [vmem:[#allocation8 + $0xa8] sm:$0xff] }
  0x33   :  { %438 = vmatpush.msra.mxu3 %v393_v35  ;;  %v420_v5 = vld [vmem:[#allocation8 + $0x130] sm:$0xff]  ;;  %v386_v7 = vld [vmem:[#allocation8 + $0x20] sm:$0xff]  ;;  %v419_v11 = vld [vmem:[#allocation8 + $0x128] sm:$0xff] }
  0x34   :  { %v385_v13 = vld [vmem:[#allocation8 + $0x18] sm:$0xff]  ;;  %v399_v21 = vld [vmem:[#allocation8 + $0x88] sm:$0xff]  ;;  %v416_v26 = vld [vmem:[#allocation8 + $0x110] sm:$0xff] }
  0x35   :  { %337 = vmatpush.bf16.msra.mxu0 %v611_v3  ;;  %439 = vmatpush.msra.mxu3 %v392_v38  ;;  %v401_v14 = vld [vmem:[#allocation8 + $0x98] sm:$0xff]  ;;  %v509_v30 = vld [vmem:[#allocation9 + $0x70] sm:$0xff] }
  0x36   :  { %350 = vmatpush.bf16.msra.mxu1 %v615_v6  ;;  %363 = vmatpush.bf16.msra.mxu2 %v619_v8  ;;  %v402_v8 = vld [vmem:[#allocation8 + $0xa0] sm:$0xff] }
  0x37   :  { %440 = vmatpush.msra.mxu3 %v391_v43  ;;  %v502_v43 = vld [vmem:[#allocation9 + $0x38] sm:$0xff] }
  0x39   :  { %338 = vmatpush.bf16.msra.mxu0 %v599_v12  ;;  %441 = vmatpush.msra.mxu3 %v390_v48  ;;  %v497_v48 = vld [vmem:[#allocation9 + $0x10] sm:$0xff] }
  0x3a   :  { %351 = vmatpush.bf16.msra.mxu1 %v603_v16  ;;  %364 = vmatpush.bf16.msra.mxu2 %v607_v17  ;;  %v418_v16 = vld [vmem:[#allocation8 + $0x120] sm:$0xff]  ;;  %v384_v17 = vld [vmem:[#allocation8 + $0x10] sm:$0xff] }
  0x3b   :  { %442 = vmatpush.msra.mxu3 %v389_v53  ;;  %v549_v53 = vld [vmem:[#allocation11 + $0x68] sm:$0xff] }
  0x3d   :  { %454 = vmatpush.msrb.mxu0 %v413_v20  ;;  %443 = vmatpush.msra.mxu3 %v388_v59  ;;  %v383_v20 = vld [vmem:[#allocation8 + $0x8] sm:$0xff]  ;;  %v543_v59 = vld [vmem:[#allocation11 + $0x38] sm:$0xff] }
  0x3e   :  { %474 = vmatpush.msrb.mxu1 %v429_v28  ;;  %v414_v28 = vld [vmem:[#allocation8 + $0x100] sm:$0xff] }
  0x3f   :  { %455 = vmatpush.msrb.mxu0 %v412_v25  ;;  %444 = vmatpush.msra.mxu3 %v387_v1  ;;  %v417_v25 = vld [vmem:[#allocation8 + $0x118] sm:$0xff] }
  0x40   :  { %475 = vmatpush.msrb.mxu1 %v428_v29  ;;  %v510_v29 = vld [vmem:[#allocation9 + $0x78] sm:$0xff] }
  0x41   :  { %456 = vmatpush.msrb.mxu0 %v411_v27  ;;  %445 = vmatpush.msra.mxu3 %v386_v7  ;;  %v415_v27 = vld [vmem:[#allocation8 + $0x108] sm:$0xff]  ;;  %v540_v7 = vld [vmem:[#allocation11 + $0x20] sm:$0xff] }
  0x42   :  { %476 = vmatpush.msrb.mxu1 %v427_v33  ;;  %515 = vmatpush.msrb.mxu2 %v510_v29  ;;  %v506_v33 = vld [vmem:[#allocation9 + $0x58] sm:$0xff] }
  0x43   :  { %457 = vmatpush.msrb.mxu0 %v410_v31  ;;  %446 = vmatpush.msra.mxu3 %v385_v13  ;;  %v508_v31 = vld [vmem:[#allocation9 + $0x68] sm:$0xff] }
  0x44   :  { %477 = vmatpush.msrb.mxu1 %v426_v37  ;;  %516 = vmatpush.msrb.mxu2 %v509_v30 }
  0x45   :  { %458 = vmatpush.msrb.mxu0 %v409_v36  ;;  %447 = vmatpush.msra.mxu3 %v384_v17 }
  0x46   :  { %478 = vmatpush.msrb.mxu1 %v425_v40  ;;  %517 = vmatpush.msrb.mxu2 %v508_v31 }
  0x47   :  { %459 = vmatpush.msrb.mxu0 %v408_v39  ;;  %448 = vmatpush.msra.mxu3 %v383_v20 }
  0x48   :  { %479 = vmatpush.msrb.mxu1 %v424_v45  ;;  %v500_v45 = vld [vmem:[#allocation9 + $0x28] sm:$0xff] }
  0x49   :  { %460 = vmatpush.msrb.mxu0 %v407_v44  ;;  %v501_v44 = vld [vmem:[#allocation9 + $0x30] sm:$0xff] }
  0x4a   :  { %480 = vmatpush.msrb.mxu1 %v423_v51  ;;  %v551_v51 = vld [vmem:[#allocation11 + $0x78] sm:$0xff] }
  0x4b   :  { %461 = vmatpush.msrb.mxu0 %v406_v49  ;;  %v496_v49 = vld [vmem:[#allocation9 + $0x8] sm:$0xff] }
  0x4c   :  { %481 = vmatpush.msrb.mxu1 %v422_v56  ;;  %v546_v56 = vld [vmem:[#allocation11 + $0x50] sm:$0xff] }
  0x4d   :  { %462 = vmatpush.msrb.mxu0 %v405_v54  ;;  %v548_v54 = vld [vmem:[#allocation11 + $0x60] sm:$0xff] }
  0x4e   :  { %482 = vmatpush.msrb.mxu1 %v421_v62 }
  0x4f   :  { %463 = vmatpush.msrb.mxu0 %v404_v60  ;;  %v743_v60 = vld [vmem:[%s1020_s3] ss:$0 sm:$0xff] }
  0x50   :  { %483 = vmatpush.msrb.mxu1 %v420_v5 }
  0x51   :  { %464 = vmatpush.msrb.mxu0 %v403_v2 }
  0x52   :  { %484 = vmatpush.msrb.mxu1 %v419_v11  ;;  %v536_v11 = vld [vmem:[#allocation11] sm:$0xff] }
  0x53   :  { %465 = vmatpush.msrb.mxu0 %v402_v8  ;;  %v539_v8 = vld [vmem:[#allocation11 + $0x18] sm:$0xff] }
  0x54   :  { %485 = vmatpush.msrb.mxu1 %v418_v16  ;;  %v745_v16 = vld [vmem:[%s1024_s7] ss:$0 sm:$0xff] }
  0x55   :  { %466 = vmatpush.msrb.mxu0 %v401_v14 }
  0x56   :  { %486 = vmatpush.msrb.mxu1 %v417_v25 }
  0x58   :  { %487 = vmatpush.msrb.mxu1 %v416_v26 }
  0x5a   :  { %488 = vmatpush.msrb.mxu1 %v415_v27 }
  0x5c   :  { %489 = vmatpush.msrb.mxu1 %v414_v28 }
  0x74   :  { %v981_v18 = vpop.permute.xlu2 %143 }
  0x75   :  { %vm145_vm4 = vcmp.eq.s32.totalorder %v981_v18, %v983_v32  ;;  %v400_v18 = vld [vmem:[#allocation8 + $0x90] sm:$0xff] }
  0x76   :  { %v146_v63 = vsel %vm145_vm4, 1, %v911_v0  ;;  %467 = vmatpush.msrb.mxu0 %v400_v18 }
  0x78   :  { %468 = vmatpush.msrb.mxu0 %v399_v21 }
  0x7e   :  { %v985_v34 = vpop.permute.xlu2 %149 }
  0x7f   :  { %vm151_vm5 = vcmp.eq.s32.totalorder %v985_v34, %v983_v32  ;;  %v505_v34 = vld [vmem:[#allocation9 + $0x50] sm:$0xff] }
  0x80   :  { %v152_v6 = vsel %vm151_vm5, 1, %v911_v0 }
  0x87   :  { %v162_v58 = vpop.permute.xlu2 %161 }
  0x88   :  { %vm163_vm6 = vcmp.eq.s32.totalorder %v162_v58, %v983_v32  ;;  %v544_v58 = vld [vmem:[#allocation11 + $0x40] sm:$0xff] }
  0x89   :  { %v164_v12 = vsel %vm163_vm6, 1, %v911_v0 }
  0x8b   :  { %v121_v23 = vpop.permute.xlu0 %120 }
  0x8c   :  { %v132_v24 = vpop.permute.xlu1 %131  ;;  %vm122_vm0 = vcmp.eq.s32.totalorder %v121_v23, %v983_v32  ;;  %v382_v23 = vld [vmem:[#allocation8] sm:$0xff] }
  0x8d   :  { %vm133_vm1 = vcmp.eq.s32.totalorder %v132_v24, %v983_v32  ;;  %v123_v46 = vsel %vm122_vm0, 1, %v911_v0  ;;  %v398_v24 = vld [vmem:[#allocation8 + $0x80] sm:$0xff]  ;;  %449 = vmatpush.msra.mxu3 %v382_v23 }
  0x8e   :  { %v134_v52 = vsel %vm133_vm1, 1, %v911_v0  ;;  %469 = vmatpush.msrb.mxu0 %v398_v24 }
  0x8f   :  { %556 = vmatpush.msrb.mxu3 %v551_v51 }
  0x94   :  { %v126_v41 = vpop.permute.xlu0 %125 }
  0x95   :  { %v138_v42 = vpop.permute.xlu1 %137  ;;  %vm127_vm2 = vcmp.eq.s32.totalorder %v126_v41, %v983_v32  ;;  %v504_v41 = vld [vmem:[#allocation9 + $0x48] sm:$0xff] }
  0x96   :  { %v128_v47 = vsel %vm127_vm2, 1, %v911_v0  ;;  %vm139_vm3 = vcmp.eq.s32.totalorder %v138_v42, %v983_v32  ;;  %v503_v42 = vld [vmem:[#allocation9 + $0x40] sm:$0xff] }
  0x97   :  { %v129_v50 = vadd.s32 %v128_v47, %v123_v46  ;;  %v140_v57 = vsel %vm139_vm3, 1, %v911_v0  ;;  %v499_v46 = vld [vmem:[#allocation9 + $0x20] sm:$0xff]  ;;  %v498_v47 = vld [vmem:[#allocation9 + $0x18] sm:$0xff] }
  0x99   :  { %v135_v55 = vadd.s32 %v134_v52, %v129_v50  ;;  %v495_v50 = vld [vmem:[#allocation9] sm:$0xff]  ;;  %v550_v52 = vld [vmem:[#allocation11 + $0x70] sm:$0xff] }
  0x9a   :  { %557 = vmatpush.msrb.mxu3 %v550_v52 }
  0x9b   :  { %v141_v61 = vadd.s32 %v140_v57, %v135_v55  ;;  %v547_v55 = vld [vmem:[#allocation11 + $0x58] sm:$0xff]  ;;  %v545_v57 = vld [vmem:[#allocation11 + $0x48] sm:$0xff] }
  0x9c   :  { %558 = vmatpush.msrb.mxu3 %v549_v53 }
  0x9d   :  { %v147_v3 = vadd.s32 %v146_v63, %v141_v61  ;;  %v542_v61 = vld [vmem:[#allocation11 + $0x30] sm:$0xff]  ;;  %v541_v63 = vld [vmem:[#allocation11 + $0x28] sm:$0xff] }
  0x9e   :  { %v156_v4 = vpop.permute.xlu1 %155  ;;  %559 = vmatpush.msrb.mxu3 %v548_v54 }
  0x9f   :  { %vm157_vm7 = vcmp.eq.s32.totalorder %v156_v4, %v983_v32  ;;  %v153_v9 = vadd.s32 %v152_v6, %v147_v3  ;;  %v507_v32 = vld [vmem:[#allocation9 + $0x60] sm:$0xff] }
  0xa0   :  { %v158_v10 = vsel %vm157_vm7, 1, %v911_v0  ;;  %518 = vmatpush.msrb.mxu2 %v507_v32  ;;  %560 = vmatpush.msrb.mxu3 %v547_v55 }
  0xa1   :  { %v159_v15 = vadd.s32 %v158_v10, %v153_v9  ;;  %v538_v9 = vld [vmem:[#allocation11 + $0x10] sm:$0xff]  ;;  %v537_v10 = vld [vmem:[#allocation11 + $0x8] sm:$0xff] }
  0xa2   :  { %519 = vmatpush.msrb.mxu2 %v506_v33  ;;  %561 = vmatpush.msrb.mxu3 %v546_v56 }
  0xa3   :  { %v165_v19 = vadd.s32 %v164_v12, %v159_v15  ;;  %v744_v12 = vld [vmem:[%s1022_s5] ss:$0 sm:$0xff] }
  0xa4   :  { %520 = vmatpush.msrb.mxu2 %v505_v34  ;;  %562 = vmatpush.msrb.mxu3 %v545_v57 }
  0xa5   :  { %v166_v22 = vcvt.s32.f32 %v165_v19 }
  0xa6   :  { %521 = vmatpush.msrb.mxu2 %v504_v41  ;;  %563 = vmatpush.msrb.mxu3 %v544_v58 }
  0xa7   :  { %v167_v0 = vpack.c.bf16 %v166_v22, %v166_v22 }
  0xa8   :  { %522 = vmatpush.msrb.mxu2 %v503_v42  ;;  %564 = vmatpush.msrb.mxu3 %v543_v59 }
  0xa9   :  { %339 = vmatmul.bf16.vlgmr.msra.gmra.mxu0 %v167_v0  ;;  %352 = vmatmul.bf16.vlgmr.msra.gmra.mxu1 %v167_v0 }
  0xaa   :  { %365 = vmatmul.bf16.vlgmr.msra.gmra.mxu2 %v167_v0  ;;  %565 = vmatpush.msrb.mxu3 %v542_v61 }
  0xab   :  { %523 = vmatpush.msrb.mxu2 %v502_v43 }
  0xac   :  { %566 = vmatpush.msrb.mxu3 %v541_v63 }
  0xad   :  { %524 = vmatpush.msrb.mxu2 %v501_v44 }
  0xae   :  { %567 = vmatpush.msrb.mxu3 %v540_v7 }
  0xaf   :  { %525 = vmatpush.msrb.mxu2 %v500_v45 }
  0xb0   :  { %568 = vmatpush.msrb.mxu3 %v539_v8 }
  0xb1   :  { %526 = vmatpush.msrb.mxu2 %v499_v46 }
  0xb2   :  { %569 = vmatpush.msrb.mxu3 %v538_v9 }
  0xb3   :  { %527 = vmatpush.msrb.mxu2 %v498_v47 }
  0xb4   :  { %570 = vmatpush.msrb.mxu3 %v537_v10 }
  0xb5   :  { %528 = vmatpush.msrb.mxu2 %v497_v48 }
  0xb6   :  { %571 = vmatpush.msrb.mxu3 %v536_v11 }
  0xb7   :  { %529 = vmatpush.msrb.mxu2 %v496_v49 }
  0xb9   :  { %530 = vmatpush.msrb.mxu2 %v495_v50 }
 0x126   :  { %v340_v35 = vpop.f32.mrf.mxu0  ;;  %v353_v36 = vpop.f32.mrf.mxu1 }
 0x127   :  { %450 = vmatmul.f32.vlgmr.msra.gmra.mxu3 %v340_v35  ;;  %470 = vmatmul.f32.vlgmr.msrb.gmra.mxu0 %v353_v36 }
 0x12d   :  { %v366_v37 = vpop.f32.mrf.mxu2 }
 0x12e   :  { %490 = vmatmul.f32.vlgmr.msrb.gmra.mxu1 %v366_v37  ;;  %v342_v38 = vpop.f32.mrf.mxu0  ;;  %v355_v39 = vpop.f32.mrf.mxu1 }
 0x135   :  { %v368_v40 = vpop.f32.mrf.mxu2 }
 0x1a4   :  { %v471_v2 = vpop.f32.mrf.mxu0 }
 0x1aa   :  { %v451_v62 = vpop.f32.mrf.mxu3 }
 0x1ab   :  { %v452_v1 = vadd.f32 %v743_v60, %v451_v62  ;;  %v491_v4 = vpop.f32.mrf.mxu1 }
 0x1ad   :  { %v472_v3 = vadd.f32 %v471_v2, %v452_v1 }
 0x1af   :  { %v492_v5 = vadd.f32 %v491_v4, %v472_v3 }
 0x1b1   :  { %746 = vtanh.f32 %v492_v5 }
 0x1b7   :  { %v747_v6 = vpop.eup %746 }
 0x1b8   :  { %531 = vmatmul.f32.vlgmr.msrb.gmra.mxu2 %v747_v6 }
 0x23b   :  { %v532_v13 = vpop.f32.mrf.mxu2 }
 0x23c   :  { %v533_v14 = vadd.f32 %v744_v12, %v532_v13 }
 0x23e   :  { %748 = vtanh.f32 %v533_v14 }
 0x244   :  { %v749_v15 = vpop.eup %748 }
 0x245   :  { %572 = vmatmul.f32.vlgmr.msrb.gmra.mxu3 %v749_v15 }
 0x2c8   :  { %v573_v17 = vpop.f32.mrf.mxu3 }
 0x2c9   :  { %v574_v18 = vadd.f32 %v745_v16, %v573_v17 }
 0x2cb   :  { %576 = vst [vmem:[#allocation12] sm:$0xff] %v574_v18 }
 0x2cc   :  { %587 = dma.vmem_to_hbm [thread:$0]  %s583_s13, 128, %s585_s16, [#allocation5]  }
 0x2cd   :  { %900 = dma.done.wait [#allocation5], 128  }
 0x2ce   :  { %901 = vsyncadd [#allocation5], 4294967168 }
 0x2cf   :  { %592 = vsyncpa [#allocation4], 1 }
 0x2d0   :  { %593 = vsyncpa [#allocation7], 1 }
 0x2d1   :  { %594 = vsyncpa [#allocation10], 1 }
 0x2d2   :  { %595 = vsyncpa [#allocation5], 1 }

</bundles_post_ra>
